<compile_context>
chip_gen: v5e
topology: v5e:2x2
jax: 0.10.0
libtpu: 0.0.40
codegen_flags: <defaults>
</compile_context>

<pallas_src>
import functools

import jax
import jax.numpy as jnp
import numpy as np
from jax import lax
from jax.experimental import pallas as pl
from jax.experimental.pallas import tpu as pltpu

BN_EPS = 1e-5  # torch.nn.BatchNorm1d default


def norm_action_kernel(a_ref, x_ref, w1_ref, b1_ref, w2_ref, b2_ref, w3_ref,
                       tbl_ref, out_ref, *scratch,
                       block_b, batch, num_actions, h2, stash_z2):
    if stash_z2:
        stat_ref, z2_stash = scratch
    else:
        (stat_ref,) = scratch
        z2_stash = None

    phase = pl.program_id(0)
    bt = pl.program_id(1)
    row0 = pl.multiple_of(bt * block_b, block_b)

    def compute_z2():
        x = x_ref[...]                                                    # [TB, Din]
        z1 = jnp.dot(x, w1_ref[...], preferred_element_type=jnp.float32) + b1_ref[...]
        x1 = jnp.maximum(z1, 0.0)                                         # [TB, H1]
        return jnp.dot(x1, w2_ref[...], preferred_element_type=jnp.float32) + b2_ref[...]

    @pl.when(phase == 0)
    def _phase0():
        @pl.when(bt == 0)
        def _init():
            stat_ref[...] = jnp.zeros_like(stat_ref)

        z2 = compute_z2()                                                 # [TB, H2]
        if stash_z2:
            z2_stash[pl.ds(row0, block_b), :] = z2

        # Single [2,H2] RMW per tile: row 0 accumulates sum(z2), row 1 sum(z2^2).
        s1 = jnp.sum(z2, axis=0, keepdims=True)                           # [1, H2]
        s2 = jnp.sum(z2 * z2, axis=0, keepdims=True)                      # [1, H2]
        rowsel = lax.broadcasted_iota(jnp.int32, (2, h2), 0) == 0
        stat_ref[...] += jnp.where(rowsel, s1, s2)
        # Output block stays resident and is fully overwritten in phase 1:
        # no zero write / no extra writeback here.

    @pl.when(phase == 1)
    def _phase1():
        inv_b = jnp.float32(1.0 / batch)
        stats = stat_ref[...]                                             # [2, H2]
        mean = stats[0:1, :] * inv_b
        var = jnp.maximum(stats[1:2, :] * inv_b - mean * mean, 0.0)       # biased var
        inv_std = lax.rsqrt(var + BN_EPS)

        if stash_z2:
            z2 = z2_stash[pl.ds(row0, block_b), :]                        # [TB, H2]
        else:
            z2 = compute_z2()                                             # recompute fallback
        centered = (z2 - mean) * inv_std

        # In-kernel action select on the fused [NA, 2*H2] table:
        # a single one-hot [TB, NA] @ table matmul, then slice scale / shift.
        onehot = (a_ref[...] ==
                  lax.broadcasted_iota(jnp.int32, (block_b, num_actions), 1)
                  ).astype(jnp.float32)
        aff = jnp.dot(onehot, tbl_ref[...], preferred_element_type=jnp.float32)
        scl = aff[:, :h2]
        sft = aff[:, h2:]

        x2 = jnp.maximum(centered * scl + sft, 0.0)                       # [TB, H2]
        # fc3 (no bias, out=1): elementwise multiply + lane reduction (XLU);
        # store lane-dense: one [block_b]-wide row of the resident out block.
        out_ref[bt, :] = jnp.sum(x2 * w3_ref[...], axis=-1)               # [TB]


def _pick_block_b(batch, max_tb=512):
    """Largest sublane-aligned divisor of `batch` that is <= max_tb."""
    if batch <= max_tb:
        return batch
    for tb in range(max_tb - max_tb % 8, 7, -8):
        if batch % tb == 0:
            return tb
    return batch


def norm_action_forward(x, a, params, *, block_b=None,
                        max_stash_bytes=16 * 2**20):
    """x: [B, input_dims] float32, a: [B] int32 action indices -> [B, 1]."""
    w1, b1, w2, b2, w3 = (params["w1"], params["b1"], params["w2"],
                          params["b2"], params["w3"])
    scales, shifts = params["action_scales"], params["action_shifts"]

    B, Din = x.shape
    H1 = w1.shape[1]
    H2 = w2.shape[1]
    NA = scales.shape[0]

    if block_b is None:
        block_b = _pick_block_b(B)
    assert B % block_b == 0, "batch must be divisible by the batch tile"
    assert block_b % 8 == 0 or block_b == B, "batch tile must be sublane-aligned"
    nb = B // block_b
    nb_last = nb - 1

    # Resident z2 stash vs. recompute-in-phase-1 fallback: the stash scales
    # with the FULL batch, so it is the first thing to blow v7x's 64 MiB VMEM
    # (or v5e's 16 MiB scoped default).
    stash_bytes = B * H2 * 4
    stash_z2 = stash_bytes <= max_stash_bytes

    # Fuse the two action tables -> one one-hot matmul in phase 1.
    table = jnp.concatenate([scales, shifts], axis=1)                     # [NA, 2*H2]
    a2d = a.astype(jnp.int32).reshape(B, 1)

    # Explicit VMEM budget (weights/tables are double-buffered by default).
    f32 = 4
    vmem_est = (
        2 * block_b * Din * f32                      # x tiles (double-buffered)
        + 2 * block_b * f32                          # action-index tiles
        + 2 * (Din * H1 + H1 + H1 * H2 + H2 + H2 + NA * 2 * H2) * f32
        + nb * block_b * f32                         # resident lane-dense output
        + 2 * H2 * f32                               # BN stat scratch
        + (stash_bytes if stash_z2 else 0)
    )
    vmem_limit = int(min(64 * 2**20, max(32 * 2**20, 2 * vmem_est)))

    kernel = functools.partial(norm_action_kernel, block_b=block_b, batch=B,
                               num_actions=NA, h2=H2, stash_z2=stash_z2)

    # Phase-aware streaming: x is only DMA'd while its block index changes
    # (phase 0); the action indices only stream in phase 1.  In recompute mode
    # phase 1 also needs x, so it keeps streaming.
    if stash_z2:
        x_map = lambda phase, bt: ((1 - phase) * bt + phase * nb_last, 0)
    else:
        x_map = lambda phase, bt: (bt, 0)
    a_map = lambda phase, bt: (phase * bt, 0)
    whole = lambda phase, bt: (0, 0)
    out_map = lambda phase, bt: (0, 0)               # whole output stays resident

    scratch = [pltpu.VMEM((2, H2), jnp.float32)]     # [sum; sum_sq] of z2
    if stash_z2:
        scratch.append(pltpu.VMEM((B, H2), jnp.float32))   # resident z2 stash

    out = pl.pallas_call(
        kernel,
        out_shape=jax.ShapeDtypeStruct((nb, block_b), jnp.float32),
        grid_spec=pltpu.PrefetchScalarGridSpec(
            num_scalar_prefetch=0,
            grid=(2, nb),                                    # (phase, batch tile)
            in_specs=[
                pl.BlockSpec((block_b, 1), a_map),           # action indices
                pl.BlockSpec((block_b, Din), x_map),         # x
                pl.BlockSpec((Din, H1), whole),              # W1 (stored [in,out])
                pl.BlockSpec((1, H1), whole),                # b1
                pl.BlockSpec((H1, H2), whole),               # W2
                pl.BlockSpec((1, H2), whole),                # b2
                pl.BlockSpec((1, H2), whole),                # w3 row
                pl.BlockSpec((NA, 2 * H2), whole),           # fused scale|shift table
            ],
            out_specs=pl.BlockSpec((nb, block_b), out_map),
            scratch_shapes=scratch,
        ),
        compiler_params=pltpu.CompilerParams(
            # BN stats couple every batch tile through the shared scratch, so
            # both grid axes stay sequential on a single TensorCore.
            dimension_semantics=("arbitrary", "arbitrary"),
            vmem_limit_bytes=vmem_limit,
        ),
    )(a2d, x, w1, b1[None, :], w2, b2[None, :], w3, table)

    return out.reshape(B, 1)


def init_params(key, input_dims, h1_dims, h2_dims, num_actions):
    ks = jax.random.split(key, 7)

    # torch Linear init: U(-1/sqrt(fan_in), 1/sqrt(fan_in)); weights stored
    # pre-transposed as [in, out] so the kernel does row-major matmuls.
    def lin(k, fan_in, fan_out):
        bound = 1.0 / np.sqrt(fan_in)
        return jax.random.uniform(k, (fan_in, fan_out), jnp.float32, -bound, bound)

    params = {
        "w1": lin(ks[0], input_dims, h1_dims),
        "b1": jax.random.uniform(ks[1], (h1_dims,), jnp.float32,
                                 -1.0 / np.sqrt(input_dims), 1.0 / np.sqrt(input_dims)),
        "w2": lin(ks[2], h1_dims, h2_dims),
        "b2": jax.random.uniform(ks[3], (h2_dims,), jnp.float32,
                                 -1.0 / np.sqrt(h1_dims), 1.0 / np.sqrt(h1_dims)),
        # fc3: bias=False, out_features=1, stored as a [1, H2] row for the
        # lane-reduction formulation.
        "w3": jax.random.uniform(ks[4], (1, h2_dims), jnp.float32,
                                 -1.0 / np.sqrt(h2_dims), 1.0 / np.sqrt(h2_dims)),
        "action_scales": jax.random.normal(ks[5], (num_actions, h2_dims), jnp.float32),
        "action_shifts": jax.random.normal(ks[6], (num_actions, h2_dims), jnp.float32),
    }
    return params


def reference_forward(x, a, params):
    """Pure-JAX reference mirroring the PyTorch module (norm_type='batch', training)."""
    z1 = x @ params["w1"] + params["b1"]
    x1 = jnp.maximum(z1, 0.0)
    z2 = x1 @ params["w2"] + params["b2"]
    mean = jnp.mean(z2, axis=0, keepdims=True)
    var = jnp.mean((z2 - mean) ** 2, axis=0, keepdims=True)   # biased, BN training
    centered = (z2 - mean) / jnp.sqrt(var + BN_EPS)
    affine = centered * params["action_scales"][a] + params["action_shifts"][a]
    x2 = jnp.maximum(affine, 0.0)
    return x2 @ params["w3"].T


if __name__ == "__main__":
    key = jax.random.PRNGKey(0)
    k_param, k_x, k_a = jax.random.split(key, 3)

    batch = 16          # two batch tiles of 8 -> exercises the two-phase BN path
    input_dims = 16
    h1_dims = 32
    h2_dims = 32
    num_actions = 4

    params = init_params(k_param, input_dims, h1_dims, h2_dims, num_actions)
    x = jax.random.normal(k_x, (batch, input_dims), jnp.float32)
    a = jax.random.randint(k_a, (batch,), 0, num_actions, jnp.int32)

    ref = jax.block_until_ready(reference_forward(x, a, params))

    # Default path: resident z2 stash (fits VMEM comfortably here).
    out_stash = jax.block_until_ready(
        norm_action_forward(x, a, params, block_b=8))
    # Forced fallback path: recompute z2 in phase 1 (v7x/v5e budget fallback).
    out_recompute = jax.block_until_ready(
        norm_action_forward(x, a, params, block_b=8, max_stash_bytes=0))

    # One-pass variance + rsqrt vs the reference's two-pass /sqrt: keep a
    # slightly looser (but still tight) tolerance.
    np.testing.assert_allclose(np.asarray(out_stash), np.asarray(ref),
                               rtol=1e-4, atol=1e-4)
    np.testing.assert_allclose(np.asarray(out_recompute), np.asarray(ref),
                               rtol=1e-4, atol=1e-4)

    print("KERNEL_OK")
</pallas_src>

<mosaic_0001>
module attributes {stable_mosaic.version = 11 : i64} {
  func.func @norm_action_kernel(%arg0: i32, %arg1: i32, %arg2: memref<8x1xi32, #tpu.memory_space<vmem>>, %arg3: memref<8x16xf32, #tpu.memory_space<vmem>>, %arg4: memref<16x32xf32, #tpu.memory_space<vmem>>, %arg5: memref<1x32xf32, #tpu.memory_space<vmem>>, %arg6: memref<32x32xf32, #tpu.memory_space<vmem>>, %arg7: memref<1x32xf32, #tpu.memory_space<vmem>>, %arg8: memref<1x32xf32, #tpu.memory_space<vmem>>, %arg9: memref<4x64xf32, #tpu.memory_space<vmem>>, %arg10: memref<2x8xf32, #tpu.memory_space<vmem>>, %arg11: memref<2x32xf32, #tpu.memory_space<vmem>>, %arg12: memref<16x32xf32, #tpu.memory_space<vmem>>) attributes {dimension_semantics = [#tpu.dimension_semantics<arbitrary>, #tpu.dimension_semantics<arbitrary>], iteration_bounds = array<i64: 2, 2>, scalar_prefetch = 0 : i64, scratch_operands = 2 : i64, tpu.core_type = #tpu.core_type<tc>, window_params = [{transform_indices = @transform_0, window_bounds = array<i64: 8, 1>}, {transform_indices = @transform_1, window_bounds = array<i64: 8, 16>}, {pipeline_mode = #tpu.pipeline_mode<synchronous>, transform_indices = @transform_2, window_bounds = array<i64: 16, 32>}, {pipeline_mode = #tpu.pipeline_mode<synchronous>, transform_indices = @transform_3, window_bounds = array<i64: 1, 32>}, {pipeline_mode = #tpu.pipeline_mode<synchronous>, transform_indices = @transform_4, window_bounds = array<i64: 32, 32>}, {pipeline_mode = #tpu.pipeline_mode<synchronous>, transform_indices = @transform_5, window_bounds = array<i64: 1, 32>}, {pipeline_mode = #tpu.pipeline_mode<synchronous>, transform_indices = @transform_6, window_bounds = array<i64: 1, 32>}, {pipeline_mode = #tpu.pipeline_mode<synchronous>, transform_indices = @transform_7, window_bounds = array<i64: 4, 64>}, {pipeline_mode = #tpu.pipeline_mode<synchronous>, transform_indices = @transform_8, window_bounds = array<i64: 2, 8>}]} {
    %c8_i32 = arith.constant 8 : i32
    %0 = arith.muli %arg1, %c8_i32 : i32
    %1 = tpu.assume_multiple %0, 8 : i32
    %c0_i32 = arith.constant 0 : i32
    %2 = arith.cmpi eq, %arg0, %c0_i32 : i32
    %3 = arith.extui %2 : i1 to i32
    %c0_i32_0 = arith.constant 0 : i32
    %4 = arith.cmpi ne, %3, %c0_i32_0 : i32
    scf.if %4 {
      %c0_i32_2 = arith.constant 0 : i32
      %8 = arith.cmpi eq, %arg1, %c0_i32_2 : i32
      %9 = arith.extui %8 : i1 to i32
      %c0_i32_3 = arith.constant 0 : i32
      %10 = arith.cmpi ne, %9, %c0_i32_3 : i32
      scf.if %10 {
        %cst_23 = arith.constant 0.000000e+00 : f32
        %42 = vector.broadcast %cst_23 : f32 to vector<2x32xf32>
        %c0_24 = arith.constant 0 : index
        %c0_25 = arith.constant 0 : index
        %43 = vector.load %arg11[%c0_24, %c0_25] : memref<2x32xf32, #tpu.memory_space<vmem>>, vector<2x32xf32>
        tpu.vector_store %arg11[%c0_24, %c0_25], %42 {strides = array<i32>} : memref<2x32xf32, #tpu.memory_space<vmem>>, vector<2x32xf32>,
      } else {
      }
      %c0 = arith.constant 0 : index
      %c0_4 = arith.constant 0 : index
      %11 = vector.load %arg3[%c0, %c0_4] : memref<8x16xf32, #tpu.memory_space<vmem>>, vector<8x16xf32>
      %c0_5 = arith.constant 0 : index
      %c0_6 = arith.constant 0 : index
      %12 = vector.load %arg4[%c0_5, %c0_6] : memref<16x32xf32, #tpu.memory_space<vmem>>, vector<16x32xf32>
      %cst = arith.constant dense<0.000000e+00> : vector<8x32xf32>
      %13 = tpu.matmul %11, %12, %cst {dimension_numbers = #tpu.dot_dimension_numbers<[1], [0], [0], [1], [0, 0, 1, 1], [], []>} : vector<8x16xf32>, vector<16x32xf32>, vector<8x32xf32> -> vector<8x32xf32>
      %c0_7 = arith.constant 0 : index
      %c0_8 = arith.constant 0 : index
      %14 = vector.load %arg5[%c0_7, %c0_8] : memref<1x32xf32, #tpu.memory_space<vmem>>, vector<1x32xf32>
      %15 = vector.broadcast %14 : vector<1x32xf32> to vector<8x32xf32>
      %16 = arith.addf %13, %15 : vector<8x32xf32>
      %cst_9 = arith.constant 0.000000e+00 : f32
      %17 = vector.broadcast %cst_9 : f32 to vector<8x32xf32>
      %18 = arith.maximumf %16, %17 : vector<8x32xf32>
      %c0_10 = arith.constant 0 : index
      %c0_11 = arith.constant 0 : index
      %19 = vector.load %arg6[%c0_10, %c0_11] : memref<32x32xf32, #tpu.memory_space<vmem>>, vector<32x32xf32>
      %cst_12 = arith.constant dense<0.000000e+00> : vector<8x32xf32>
      %20 = tpu.matmul %18, %19, %cst_12 {dimension_numbers = #tpu.dot_dimension_numbers<[1], [0], [0], [1], [0, 0, 1, 1], [], []>} : vector<8x32xf32>, vector<32x32xf32>, vector<8x32xf32> -> vector<8x32xf32>
      %c0_13 = arith.constant 0 : index
      %c0_14 = arith.constant 0 : index
      %21 = vector.load %arg7[%c0_13, %c0_14] : memref<1x32xf32, #tpu.memory_space<vmem>>, vector<1x32xf32>
      %22 = vector.broadcast %21 : vector<1x32xf32> to vector<8x32xf32>
      %23 = arith.addf %20, %22 : vector<8x32xf32>
      %24 = arith.index_cast %1 : i32 to index
      %c0_15 = arith.constant 0 : index
      %25 = vector.load %arg12[%24, %c0_15] : memref<16x32xf32, #tpu.memory_space<vmem>>, vector<8x32xf32>
      tpu.vector_store %arg12[%24, %c0_15], %23 {strides = array<i32>} : memref<16x32xf32, #tpu.memory_space<vmem>>, vector<8x32xf32>,
      %cst_16 = arith.constant dense<0.000000e+00> : vector<32xf32>
      %26 = vector.multi_reduction <add>, %23, %cst_16 [0] : vector<8x32xf32> to vector<32xf32>
      %27 = vector.shape_cast %26 : vector<32xf32> to vector<1x32xf32>
      %28 = arith.mulf %23, %23 : vector<8x32xf32>
      %cst_17 = arith.constant dense<0.000000e+00> : vector<32xf32>
      %29 = vector.multi_reduction <add>, %28, %cst_17 [0] : vector<8x32xf32> to vector<32xf32>
      %30 = vector.shape_cast %29 : vector<32xf32> to vector<1x32xf32>
      %31 = tpu.iota {dimensions = array<i32: 0>} : vector<2x32xi32>
      %c0_i32_18 = arith.constant 0 : i32
      %32 = vector.broadcast %c0_i32_18 : i32 to vector<2x32xi32>
      %33 = arith.cmpi eq, %31, %32 : vector<2x32xi32>
      %c0_19 = arith.constant 0 : index
      %c0_20 = arith.constant 0 : index
      %34 = vector.load %arg11[%c0_19, %c0_20] : memref<2x32xf32, #tpu.memory_space<vmem>>, vector<2x32xf32>
      %35 = vector.shape_cast %27 : vector<1x32xf32> to vector<1x32xf32>
      %36 = vector.broadcast %35 : vector<1x32xf32> to vector<2x32xf32>
      %37 = vector.shape_cast %30 : vector<1x32xf32> to vector<1x32xf32>
      %38 = vector.broadcast %37 : vector<1x32xf32> to vector<2x32xf32>
      %39 = arith.select %33, %36, %38 : vector<2x32xi1>, vector<2x32xf32>
      %40 = arith.addf %34, %39 : vector<2x32xf32>
      %c0_21 = arith.constant 0 : index
      %c0_22 = arith.constant 0 : index
      %41 = vector.load %arg11[%c0_21, %c0_22] : memref<2x32xf32, #tpu.memory_space<vmem>>, vector<2x32xf32>
      tpu.vector_store %arg11[%c0_21, %c0_22], %40 {strides = array<i32>} : memref<2x32xf32, #tpu.memory_space<vmem>>, vector<2x32xf32>,
    } else {
    }
    %c1_i32 = arith.constant 1 : i32
    %5 = arith.cmpi eq, %arg0, %c1_i32 : i32
    %6 = arith.extui %5 : i1 to i32
    %c0_i32_1 = arith.constant 0 : i32
    %7 = arith.cmpi ne, %6, %c0_i32_1 : i32
    scf.if %7 {
      %c0 = arith.constant 0 : index
      %c0_2 = arith.constant 0 : index
      %8 = vector.load %arg11[%c0, %c0_2] : memref<2x32xf32, #tpu.memory_space<vmem>>, vector<2x32xf32>
      %9 = vector.extract_strided_slice %8 {offsets = [0, 0], sizes = [1, 32], strides = [1, 1]} : vector<2x32xf32> to vector<1x32xf32>
      %cst = arith.constant 6.250000e-02 : f32
      %10 = vector.broadcast %cst : f32 to vector<1x32xf32>
      %11 = arith.mulf %9, %10 : vector<1x32xf32>
      %12 = vector.extract_strided_slice %8 {offsets = [1, 0], sizes = [1, 32], strides = [1, 1]} : vector<2x32xf32> to vector<1x32xf32>
      %cst_3 = arith.constant 6.250000e-02 : f32
      %13 = vector.broadcast %cst_3 : f32 to vector<1x32xf32>
      %14 = arith.mulf %12, %13 : vector<1x32xf32>
      %15 = arith.mulf %11, %11 : vector<1x32xf32>
      %16 = arith.subf %14, %15 : vector<1x32xf32>
      %cst_4 = arith.constant 0.000000e+00 : f32
      %17 = vector.broadcast %cst_4 : f32 to vector<1x32xf32>
      %18 = arith.maximumf %16, %17 : vector<1x32xf32>
      %cst_5 = arith.constant 9.99999974E-6 : f32
      %19 = vector.broadcast %cst_5 : f32 to vector<1x32xf32>
      %20 = arith.addf %18, %19 : vector<1x32xf32>
      %21 = math.rsqrt %20 : vector<1x32xf32>
      %22 = arith.index_cast %1 : i32 to index
      %c0_6 = arith.constant 0 : index
      %23 = vector.load %arg12[%22, %c0_6] : memref<16x32xf32, #tpu.memory_space<vmem>>, vector<8x32xf32>
      %24 = vector.broadcast %11 : vector<1x32xf32> to vector<8x32xf32>
      %25 = arith.subf %23, %24 : vector<8x32xf32>
      %26 = vector.broadcast %21 : vector<1x32xf32> to vector<8x32xf32>
      %27 = arith.mulf %25, %26 : vector<8x32xf32>
      %c0_7 = arith.constant 0 : index
      %c0_8 = arith.constant 0 : index
      %28 = vector.load %arg2[%c0_7, %c0_8] : memref<8x1xi32, #tpu.memory_space<vmem>>, vector<8x1xi32>
      %29 = tpu.iota {dimensions = array<i32: 1>} : vector<8x4xi32>
      %30 = vector.broadcast %28 : vector<8x1xi32> to vector<8x4xi32>
      %31 = arith.cmpi eq, %30, %29 : vector<8x4xi32>
      %32 = arith.extui %31 : vector<8x4xi1> to vector<8x4xi32>
      %33 = arith.sitofp %32 : vector<8x4xi32> to vector<8x4xf32>
      %c0_9 = arith.constant 0 : index
      %c0_10 = arith.constant 0 : index
      %34 = vector.load %arg9[%c0_9, %c0_10] : memref<4x64xf32, #tpu.memory_space<vmem>>, vector<4x64xf32>
      %cst_11 = arith.constant dense<0.000000e+00> : vector<8x64xf32>
      %35 = tpu.matmul %33, %34, %cst_11 {dimension_numbers = #tpu.dot_dimension_numbers<[1], [0], [0], [1], [0, 0, 1, 1], [], []>} : vector<8x4xf32>, vector<4x64xf32>, vector<8x64xf32> -> vector<8x64xf32>
      %36 = vector.extract_strided_slice %35 {offsets = [0, 0], sizes = [8, 32], strides = [1, 1]} : vector<8x64xf32> to vector<8x32xf32>
      %37 = vector.extract_strided_slice %35 {offsets = [0, 32], sizes = [8, 32], strides = [1, 1]} : vector<8x64xf32> to vector<8x32xf32>
      %38 = arith.mulf %27, %36 : vector<8x32xf32>
      %39 = arith.addf %38, %37 : vector<8x32xf32>
      %cst_12 = arith.constant 0.000000e+00 : f32
      %40 = vector.broadcast %cst_12 : f32 to vector<8x32xf32>
      %41 = arith.maximumf %39, %40 : vector<8x32xf32>
      %c0_13 = arith.constant 0 : index
      %c0_14 = arith.constant 0 : index
      %42 = vector.load %arg8[%c0_13, %c0_14] : memref<1x32xf32, #tpu.memory_space<vmem>>, vector<1x32xf32>
      %43 = vector.broadcast %42 : vector<1x32xf32> to vector<8x32xf32>
      %44 = arith.mulf %41, %43 : vector<8x32xf32>
      %cst_15 = arith.constant dense<0.000000e+00> : vector<8xf32>
      %45 = vector.multi_reduction <add>, %44, %cst_15 [1] : vector<8x32xf32> to vector<8xf32>
      %46 = arith.index_cast %arg1 : i32 to index
      %c0_16 = arith.constant 0 : index
      %47 = vector.load %arg10[%46, %c0_16] : memref<2x8xf32, #tpu.memory_space<vmem>>, vector<1x8xf32>
      %48 = vector.shape_cast %47 : vector<1x8xf32> to vector<8xf32>
      %49 = vector.shape_cast %45 : vector<8xf32> to vector<1x8xf32>
      tpu.vector_store %arg10[%46, %c0_16], %49 {strides = array<i32>} : memref<2x8xf32, #tpu.memory_space<vmem>>, vector<1x8xf32>,
    } else {
    }
    return
  }
  func.func @transform_0(%arg0: i32, %arg1: i32) -> (i32, i32) {
    %0 = arith.muli %arg0, %arg1 : i32
    %c0_i32 = arith.constant 0 : i32
    %c0_i32_0 = arith.constant 0 : i32
    return %0, %c0_i32 : i32, i32
  }
  func.func @transform_1(%arg0: i32, %arg1: i32) -> (i32, i32) {
    %c1_i32 = arith.constant 1 : i32
    %0 = arith.subi %c1_i32, %arg0 : i32
    %1 = arith.muli %0, %arg1 : i32
    %c1_i32_0 = arith.constant 1 : i32
    %2 = arith.muli %arg0, %c1_i32_0 : i32
    %3 = arith.addi %1, %2 : i32
    %c0_i32 = arith.constant 0 : i32
    %c0_i32_1 = arith.constant 0 : i32
    return %3, %c0_i32 : i32, i32
  }
  func.func @transform_2(%arg0: i32, %arg1: i32) -> (i32, i32) {
    %c0_i32 = arith.constant 0 : i32
    %c0_i32_0 = arith.constant 0 : i32
    %c0_i32_1 = arith.constant 0 : i32
    return %c0_i32, %c0_i32_0 : i32, i32
  }
  func.func @transform_3(%arg0: i32, %arg1: i32) -> (i32, i32) {
    %c0_i32 = arith.constant 0 : i32
    %c0_i32_0 = arith.constant 0 : i32
    %c0_i32_1 = arith.constant 0 : i32
    return %c0_i32, %c0_i32_0 : i32, i32
  }
  func.func @transform_4(%arg0: i32, %arg1: i32) -> (i32, i32) {
    %c0_i32 = arith.constant 0 : i32
    %c0_i32_0 = arith.constant 0 : i32
    %c0_i32_1 = arith.constant 0 : i32
    return %c0_i32, %c0_i32_0 : i32, i32
  }
  func.func @transform_5(%arg0: i32, %arg1: i32) -> (i32, i32) {
    %c0_i32 = arith.constant 0 : i32
    %c0_i32_0 = arith.constant 0 : i32
    %c0_i32_1 = arith.constant 0 : i32
    return %c0_i32, %c0_i32_0 : i32, i32
  }
  func.func @transform_6(%arg0: i32, %arg1: i32) -> (i32, i32) {
    %c0_i32 = arith.constant 0 : i32
    %c0_i32_0 = arith.constant 0 : i32
    %c0_i32_1 = arith.constant 0 : i32
    return %c0_i32, %c0_i32_0 : i32, i32
  }
  func.func @transform_7(%arg0: i32, %arg1: i32) -> (i32, i32) {
    %c0_i32 = arith.constant 0 : i32
    %c0_i32_0 = arith.constant 0 : i32
    %c0_i32_1 = arith.constant 0 : i32
    return %c0_i32, %c0_i32_0 : i32, i32
  }
  func.func @transform_8(%arg0: i32, %arg1: i32) -> (i32, i32) {
    %c0_i32 = arith.constant 0 : i32
    %c0_i32_0 = arith.constant 0 : i32
    %c0_i32_1 = arith.constant 0 : i32
    return %c0_i32, %c0_i32_0 : i32, i32
  }
}

</mosaic_0001>

<bundles_post_ra>
// kernel: tpu_custom_call.1
= control target key start
LH: loop header
LB: loop body
LE: loop exit
PB: predicated region body
PF: predicated region fallthrough
CT: control target
= control target key end

     0   :  { %13 = vsyncpa [#allocation5], 0  ;;  %s1161_s0 = inlined_call_operand.vmem [shape: s32[16,1], index: 0, kind: input, shape index: {}]   ;;  %s1162_s1 = inlined_call_operand.vmem [shape: f32[16,16], index: 1, kind: input, shape index: {}]   ;;  %s1163_s2 = inlined_call_operand.hbm [shape: f32[16,32], index: 2, kind: input, shape index: {}]   ;;  %s1164_s3 = inlined_call_operand.hbm [shape: f32[1,32], index: 3, kind: input, shape index: {}]   ;;  %s1165_s4 = inlined_call_operand.hbm [shape: f32[32,32], index: 4, kind: input, shape index: {}]   ;;  %s1166_s5 = inlined_call_operand.vmem [shape: f32[1,32], index: 5, kind: input, shape index: {}]   ;;  %s1167_s6 = inlined_call_operand.vmem [shape: f32[1,32], index: 6, kind: input, shape index: {}]   ;;  %s1168_s7 = inlined_call_operand.vmem [shape: f32[4,64], index: 7, kind: input, shape index: {}]   ;;  %s1169_s8 = inlined_call_operand.hbm [shape: f32[2,8], index: 8, kind: output, shape index: {}]  }
   0x1   :  { %14 = vsyncpa [#allocation8], 0 }
   0x2   :  { %15 = vsyncpa [#allocation6], 0  ;;  %s1031_s27 = smov 0   ;;  %s1033_s28 = smov 0  }
   0x3   :  { %s1035_s29 = smov 0   ;;  %s1037_s30 = smov 0  }
   0x4   :  { %s1039_s9 = smov 0  }
   0x5 LB: > { %s271_s12 = sshll.u32 %s1164_s3, 4  ;;  %s691_s13 = sadd.s32 4294967295, %s974_s9   ;;  %s974_s9 = sphi %s1039_s9, %s21_s9   ;;  %s970_s30 = sphi %s1037_s30, %s1176_s30   ;;  %s966_s29 = sphi %s1035_s29, %s1175_s29   ;;  %s962_s28 = sphi %s1033_s28, %s1174_s28   ;;  %s958_s27 = sphi %s1031_s27, %s1173_s27   ;;  %s272_s12 = int_to_ptr.hbm [resolvable:$true] %s271_s12 }
   0x6   : > { %p692_p0 = scmp.ge.s32.totalorder %s974_s9, 1  ;;  %p245_p1 = scmp.lt.s32.totalorder %s974_s9, 5 }
   0x7   : > { %p1064_p2 = scmp.eq.s32.totalorder %s691_s13, 0  ;;  %s976_s16 = smov [#allocation7]  }
   0x8   : > { %p1068_p3 = pnand %p692_p0, %p245_p1  ;;  %s273_s17 = sshll.u32 %s976_s16, 4  ;;  %s274_s17 = int_to_ptr.vmem [resolvable:$true] %s273_s17 }
   0x9   : > { %s30_s19 = sadd.s32 1, %s966_s29  ;;  %s33_s20 = sadd.s32 1, %s970_s30 }
   0xa   : > { %p732_p4 = pneg %p1068_p3  ;;  %p31_p6 = scmp.ge.s32.totalorder %s30_s19, 2 }
   0xb   : > { %s256_s23 = sshll.u32 %s1163_s2, 4  ;;  %s977_s24 = smov [#allocation4]   ;;  %s257_s23 = int_to_ptr.hbm [resolvable:$true] %s256_s23 }
   0xc   : > { %p1076_p5 = pnand %p1064_p2, %p732_p4  ;;  %s1178_s19 = smov (%p31_p6, %s30_s19), 0 }
   0xd   : > { %s1180_s20 = smov (!%p31_p6, %s33_s20), %s970_s30  ;;  %s258_s25 = sshll.u32 %s977_s24, 4  ;;  %s259_s25 = int_to_ptr.vmem [resolvable:$true] %s258_s25 }
   0xe   : > { %738 = dma.hbm_to_vmem [thread:$0]  (!%p1076_p5), %s272_s12, 16, %s274_s17, [#allocation8]  }
   0xf   : > { %p35_p7 = scmp.ge.s32.totalorder %s1180_s20, 2  ;;  %s282_s11 = sshll.u32 %s1165_s4, 4  ;;  %s283_s11 = int_to_ptr.hbm [resolvable:$true] %s282_s11 }
  0x10   : > { %s978_s12 = smov 128   ;;  %s979_s16 = smov 8  }
  0x11   : > { %s1182_s20 = smov (%p35_p7, %s1180_s20), 0  ;;  %s980_s17 = smov [#allocation9]  }
  0x12   : > { %735 = dma.hbm_to_vmem [thread:$0]  (!%p1076_p5), %s257_s23, 256, %s259_s25, [#allocation5], %s978_s12, %s978_s12, %s979_s16  }
  0x13   : > { %s284_s21 = sshll.u32 %s980_s17, 4  ;;  %331 = sbr.rel (%p1068_p3) target bundleno = 824 (0x338), region = 52  ;;  %s285_s21 = int_to_ptr.vmem [resolvable:$true] %s284_s21 }
  0x14   : > { %741 = dma.hbm_to_vmem [thread:$0]  (!%p1076_p5), %s283_s11, 512, %s285_s21, [#allocation8], %s978_s12, %s978_s12, %s979_s16  }
  0x18   : > { %945 = dma.done.wait (%p1064_p2), [#allocation5], 256  }
  0x19   : > { %947 = vsyncadd (%p1064_p2), [#allocation5], 4294967040 }
  0x1a   : > { %949 = dma.done.wait (%p1064_p2), [#allocation8], 528  }
  0x1b   : > { %951 = vsyncadd (%p1064_p2), [#allocation8], 4294966768  ;;  %s378_s15 = smul.u32 %s958_s27, %s962_s28  ;;  %s384_s18 = ssub.s32 1, %s962_s28 }
  0x1c   : > { %s385_s22 = smul.u32 %s958_s27, %s384_s18  ;;  %s703_s23 = sshll.u32 %s958_s27, 3 }
  0x1d   : > { %p379_p8 = scmp.lt.s32.totalorder %s378_s15, 1  ;;  %p704_p10 = scmp.ne.s32.totalorder %s962_s28, 0 }
  0x1e   : > { %s386_s24 = sadd.s32 %s962_s28, %s385_s22  ;;  %p705_p11 = scmp.ne.s32.totalorder (!%p704_p10), %s958_s27, 0 }
  0x1f   : > { %s1184_s15 = smov (!%p379_p8, %s378_s15), 1  ;;  %p387_p9 = scmp.lt.s32.totalorder %s386_s24, 1 }
  0x20   : > { %s701_s25 = sshll.u32 %s1184_s15, 3  ;;  %398 = sbr.rel (%p704_p10) target bundleno = 325 (0x145), region = 68 }
  0x21   : > { %s1118_s14 = scalar_lea.vmem %s1161_s0, %s701_s25  ;;  %s1186_s24 = smov (!%p387_p9, %s386_s24), 1 }
  0x22   : > { %s702_s11 = sshll.u32 %s1186_s24, 3 }
  0x23   : > { %s390_s17 = scalar_lea.vmem %s1162_s1, %s702_s11 }
  0x25   : > { %402 = sbr.rel (%p705_p11) target bundleno = 44 (0x2c), region = 72 }
  0x2a   : > { %vm403_vm0 = vcmask 254976   ;;  %v981_v0 = vmov 0.0  }
  0x2b   : > { %404 = vst.msk [vmem:[#allocation2] sm:$0x3] %vm403_vm0, %v981_v0 }
  0x2c PF: > { %v407_v1 = vld [vmem:[#allocation4 + $0x8] sm:$0xff]  ;;  %v406_v2 = vld [vmem:[#allocation4] sm:$0xff]  ;;  %vm412_vm1 = vcmask 130048   ;;  %v437_v7 = vld [vmem:[#allocation9] sm:$0xff]  ;;  %vm445_vm2 = vcmask 261120   ;;  %s469_s18 = scalar_lea.vmem [#allocation3], %s703_s23  ;;  %v486_v21 = vlaneseq }
  0x2d   : > { %430 = vmatpush.msra.mxu0 %v407_v1  ;;  %v405_v3 = vld [vmem:[%s390_s17] sm:$0xff]  ;;  %v439_v5 = vld [vmem:[#allocation9 + $0x10] sm:$0xff]  ;;  %v438_v6 = vld [vmem:[#allocation9 + $0x8] sm:$0xff]  ;;  %vm492_vm4 = vcmask 254976  }
  0x2e   : > { %v440_v4 = vld [vmem:[#allocation9 + $0x18] sm:$0xff]  ;;  %v487_v26 = vshrl.u32 %v486_v21, 7 }
  0x2f   : > { %461 = vmatpush.msra.mxu1 %v440_v4  ;;  %431 = vmatpush.msra.mxu0 %v406_v2  ;;  %v800_v8 = vld [vmem:[#allocation7] ss:$0 sm:$0xff]  ;;  %v801_v12 = vld [vmem:[%s1166_s5] ss:$0 sm:$0xff] }
  0x30   : > { %706 = vmatmul.msk.f32.vlgmr.msra.gmra.mxu0 %vm412_vm1, %v405_v3  ;;  %vm488_vm3 = vcmp.eq.s32.totalorder %v487_v26, 0 }
  0x31   : > { %462 = vmatpush.msra.mxu1 %v439_v5 }
  0x32   : > { %v489_v32 = vld [vmem:[#allocation2] sm:$0x3] }
  0x33   : > { %463 = vmatpush.msra.mxu1 %v438_v6 }
  0x35   : > { %464 = vmatpush.msra.mxu1 %v437_v7 }
  0xad   : > { %v433_v9 = vpop.f32.mrf.mxu0 }
  0xae   : > { %v434_v10 = vadd.f32 %v800_v8, %v433_v9 }
  0xb0   : > { %v436_v11 = vmax.f32 %v434_v10, 0.0 }
  0xb2   : > { %707 = vmatmul.msk.f32.vlgmr.msra.gmra.mxu1 %vm445_vm2, %v436_v11 }
 0x12f   : > { %v466_v13 = vpop.f32.mrf.mxu1 }
 0x130   : > { %v467_v14 = vadd.f32 %v801_v12, %v466_v13 }
 0x132   : > { %470 = vst.msk [vmem:[%s469_s18] sm:$0xff] %vm445_vm2, %v467_v14  ;;  %v471_v15 = vsel %vm445_vm2, %v467_v14, 0.0  ;;  %v478_v16 = vmul.f32 %v467_v14, %v467_v14 }
 0x133   : > { %v472_v17 = vrot.slane %v471_v15, 4 }
 0x134   : > { %v479_v18 = vsel %vm445_vm2, %v478_v16, 0.0 }
 0x135   : > { %v473_v19 = vadd.f32 %v472_v17, %v471_v15  ;;  %v480_v20 = vrot.slane %v479_v18, 4 }
 0x137   : > { %v474_v22 = vrot.slane %v473_v19, 2  ;;  %v481_v23 = vadd.f32 %v480_v20, %v479_v18 }
 0x139   : > { %v475_v24 = vadd.f32 %v474_v22, %v473_v19  ;;  %v482_v25 = vrot.slane %v481_v23, 2 }
 0x13b   : > { %v476_v27 = vrot.slane %v475_v24, 1  ;;  %v483_v28 = vadd.f32 %v482_v25, %v481_v23 }
 0x13d   : > { %v484_v29 = vrot.slane %v483_v28, 1  ;;  %v477_v30 = vadd.f32 %v476_v27, %v475_v24 }
 0x13f   : > { %v485_v31 = vadd.f32 %v484_v29, %v483_v28 }
 0x141   : > { %v490_v33 = vsel %vm488_vm3, %v477_v30, %v485_v31 }
 0x142   : > { %v491_v34 = vadd.f32 %v490_v33, %v489_v32 }
 0x144   : > { %493 = vst.msk [vmem:[#allocation2] sm:$0x3] %vm492_vm4, %v491_v34 }
 0x145 PF: > { %p708_p12 = scmp.ne.s32.totalorder %s962_s28, 1 }
 0x146   : > { %s984_s28 = smov (!%p708_p12), 96   ;;  %s517_s25 = scalar_lea.vmem (!%p708_p12), [#allocation3], %s703_s23 }
 0x147   : > { %497 = sbr.rel (%p708_p12) target bundleno = 818 (0x332), region = 76  ;;  %s580_s23 = scalar_lea.vmem (!%p708_p12), [#allocation10], %s958_s27 }
 0x14c   : > { %v523_v35 = vld [vmem:[%s1118_s14] sm:$0xff]  ;;  %v982_v36 = vmov 0   ;;  %vm537_vm5 = vcmask 1043456   ;;  %v524_v38 = vlaneseq  ;;  %vm533_vm6 = vcmask 31744  }
 0x14d   : > { %802 = vset.pattern.permute.xlu0 %v982_v36  ;;  %v532_v37 = vld [vmem:[%s1168_s7] sm:$0xf]  ;;  %v983_v41 = vmov 0.0   ;;  %vm573_vm11 = vcmask 261120   ;;  %vm581_vm12 = vcmask 57344  }
 0x14e   : > { %527 = vperm.xlu0 %802, %v523_v35   ;;  %710 = vmatpush.msk.msra.mxu0 %vm537_vm5, %v532_v37  ;;  %v525_v39 = vand.u32 127, %v524_v38  ;;  %v498_v44 = vld [vmem:[#allocation2] sm:$0x3] }
 0x14f   : > { %v499_v45 = vmul.f32 0.0625, %v498_v44  ;;  %v518_v59 = vld [vmem:[%s517_s25] sm:$0xff] }
 0x150   : > { %v803_v2 = vld [vmem:[%s1167_s6] ss:$0 sm:$0xff] }
 0x151   : > { %v500_v46 = vmul.f32 %v499_v45, %v499_v45  ;;  %v519_v57 = vperm.slane %v499_v45, 0 }
 0x153   : > { %v502_v47 = vrot.slane %v500_v46, 7  ;;  %v520_v60 = vsub.f32 %v518_v59, %v519_v57 }
 0x155   : > { %v504_v48 = vsub.f32 %v499_v45, %v502_v47 }
 0x157   : > { %v505_v49 = vmax.f32 %v504_v48, 0.0 }
 0x159   : > { %v506_v50 = vadd.f32 1e-05, %v505_v49 }
 0x15b   : > { %804 = vrsqrt.f32 %v506_v50  ;;  %vm513_vm8 = vweird.f32 %v506_v50 }
 0x161   : > { %v805_v51 = vpop.eup %804 }
 0x162   : > { %v508_v52 = vmul.f32 %v805_v51, %v506_v50  ;;  %vm514_vm9 = vweird.f32 %v805_v51 }
 0x163   : > { %vm515_vm10 = vmor %vm513_vm8, %vm514_vm9 }
 0x164   : > { %v509_v53 = vmul.f32 %v805_v51, %v508_v52 }
 0x166   : > { %v510_v54 = vmul.f32 0.5, %v509_v53 }
 0x168   : > { %v511_v55 = vsub.f32 1.5, %v510_v54 }
 0x16a   : > { %v512_v56 = vmul.f32 %v805_v51, %v511_v55 }
 0x16c   : > { %v516_v58 = vsel %vm515_vm10, %v805_v51, %v512_v56 }
 0x16d   : > { %v521_v61 = vperm.slane %v516_v58, 1 }
 0x16f   : > { %v522_v62 = vmul.f32 %v521_v61, %v520_v60 }
 0x1c0   : > { %v528_v40 = vpop.permute.xlu0 %527 }
 0x1c1   : > { %vm529_vm7 = vcmp.eq.s32.totalorder %v528_v40, %v525_v39 }
 0x1c2   : > { %v709_v42 = vsel %vm529_vm7, 1.0, %v983_v41 }
 0x1c3   : > { %711 = vmatmul.msk.f32.vlgmr.msra.gmra.mxu0 %vm533_vm6, %v709_v42 }
 0x240   : > { %v558_v43 = vpop.f32.mrf.mxu0 }
 0x241   : > { %563 = vrot.lane.b32.xlu0 %v558_v43, %s984_s28  ;;  %v561_v63 = vmul.f32 %v558_v43, %v522_v62 }
 0x2b3   : > { %v564_v0 = vpop.permute.xlu0 %563 }
 0x2b4   : > { %v566_v1 = vadd.f32 %v564_v0, %v561_v63 }
 0x2b6   : > { %v567_v3 = vmax.f32 %v566_v1, 0.0 }
 0x2b8   : > { %v572_v4 = vmul.f32 %v803_v2, %v567_v3 }
 0x2ba   : > { %v574_v5 = vsel %vm573_vm11, %v572_v4, 0.0 }
 0x2bb   : > { %575 = vadd.xlane.f32.xlu1 %v574_v5 }
 0x32e   : > { %v576_v6 = vpop.xlane.xlu1 %575 }
 0x32f   : > { %v578_v7 = vperm.slane %v576_v6, %v525_v39 }
 0x331   : > { %582 = vst.msk [vmem:[%s580_s23] sm:$0x1] %vm581_vm12, %v578_v7 }
 0x332 PF: > { %p748_p13 = scmp.eq.s32.totalorder %s691_s13, 3  ;;  %s591_s12 = sshll.u32 %s1169_s8, 4  ;;  %s592_s12 = int_to_ptr.hbm [resolvable:$true] %s591_s12 }
 0x333   : > { %s985_s16 = smov [#allocation10]  }
 0x334   : > { %s589_s17 = sshll.u32 %s985_s16, 4  ;;  %s590_s17 = int_to_ptr.vmem [resolvable:$true] %s589_s17 }
 0x335   : > { %729 = dma.vmem_to_hbm [thread:$0]  (%p748_p13), %s590_s17, 32, %s592_s12, [#allocation6]  }
 0x336   : > { %953 = dma.done.wait (%p748_p13), [#allocation6], 32  }
 0x337   : > { %955 = vsyncadd (%p748_p13), [#allocation6], 4294967264 }
 0x338 PF: > { %s21_s9 = sadd.s32 1, %s974_s9   ;;  %s1173_s27 = smov %s966_s29 }
 0x339   : > { %p18_p0 = scmp.ge.s32.totalorder %s21_s9, 6   ;;  %s1174_s28 = smov %s970_s30 }
 0x33a   : > { %s1175_s29 = smov %s1178_s19  ;;  %s1176_s30 = smov %s1182_s20 }
 0x33b   :  { %20 = sbr.rel (!%p18_p0) target bundleno = 5 (0x5), region = 110 }
 0x340   :  { %605 = vsyncpa [#allocation5], 1 }
 0x341   :  { %607 = vsyncpa [#allocation5 + $0x1], 1 }
 0x342   :  { %608 = vsyncpa [#allocation8], 1 }
 0x343   :  { %609 = vsyncpa [#allocation6], 1 }
 0x344   :  { %611 = vsyncpa [#allocation6 + $0x1], 1 }

</bundles_post_ra>
